<compile_context>
chip_gen: v7x
topology: tpu7x:2x2x1
jax: 0.10.0
libtpu: 0.0.40
codegen_flags: <defaults>
</compile_context>

<pallas_src>
import functools

import jax
import jax.numpy as jnp
from jax.experimental import pallas as pl
from jax.experimental.pallas import tpu as pltpu


def _round_up(n, m):
    return -(-n // m) * m


def decoder_nb_kernel(x_ref, w1_ref, b1_ref, wh_ref, bh_ref, tc_ref, p_ref,
                      *, eps_lo, eps_hi):
    # Hidden layer: MXU matmul + bias + ReLU (f32 accumulation / activations).
    h = jnp.dot(x_ref[...], w1_ref[...], preferred_element_type=jnp.float32)
    h = jnp.maximum(h + b1_ref[...], 0.0)

    # Fused heads: one [tile_b, Hp] @ [Hp, 2D] MXU pass -> [tc | probs] logits.
    z = jnp.dot(h.astype(wh_ref.dtype), wh_ref[...],
                preferred_element_type=jnp.float32)
    z = z + bh_ref[...]

    d = tc_ref.shape[-1]
    z_tc, z_p = z[:, :d], z[:, d:]

    # One EUP exp over the whole block feeds both heads:
    #   softplus(z) = max(z, 0) + log1p(exp(-|z|))
    #   sigmoid(z)  = where(z >= 0, 1, exp(-|z|)) / (1 + exp(-|z|))
    e = jnp.exp(-jnp.abs(z))
    e_tc, e_p = e[:, :d], e[:, d:]

    tc = jnp.maximum(jnp.maximum(z_tc, 0.0) + jnp.log1p(e_tc), eps_lo)
    probs = jnp.where(z_p >= 0.0, 1.0, e_p) / (1.0 + e_p)
    probs = jnp.clip(probs, eps_lo, eps_hi)      # strictly inside (0, 1)

    # Two lane-dense [tile_b, D] stores; no concat, no extra VMEM temp.
    tc_ref[...] = tc.astype(tc_ref.dtype)
    p_ref[...] = probs.astype(p_ref.dtype)


def prepare_decoder_params(w1, b1, w_tc, b_tc, w_p, b_p,
                           compute_dtype=jnp.float32):
    """One-time parameter prep, hoisted out of the per-call path.

    Fuses the two head weights into a single [Hp, 2D] matrix and zero-pads the
    hidden dim to a multiple of 128.  Padding is exact: relu(x @ 0 + 0) = 0
    rows contribute nothing to the heads.
    """
    Z, H = w1.shape
    D = w_tc.shape[1]
    Hp = _round_up(H, 128)

    w1p = jnp.zeros((Z, Hp), compute_dtype).at[:, :H].set(
        w1.astype(compute_dtype))
    b1p = jnp.zeros((1, Hp), jnp.float32).at[:, :H].set(
        jnp.asarray(b1, jnp.float32).reshape(1, H))

    w_heads = jnp.zeros((Hp, 2 * D), compute_dtype)
    w_heads = w_heads.at[:H, :D].set(w_tc.astype(compute_dtype))
    w_heads = w_heads.at[:H, D:].set(w_p.astype(compute_dtype))
    b_heads = jnp.concatenate(
        [jnp.asarray(b_tc, jnp.float32).reshape(1, D),
         jnp.asarray(b_p, jnp.float32).reshape(1, D)], axis=1)
    return w1p, b1p, w_heads, b_heads


@functools.partial(jax.jit,
                   static_argnames=("tile_b", "out_dtype", "min_grid"))
def decoder_neg_binomial(x, w1p, b1p, w_heads, b_heads, *,
                         tile_b=1024, out_dtype=jnp.float32, min_grid=2):
    """Returns (tc, probs), each of shape [B, D]."""
    B, Z = x.shape
    Hp = w1p.shape[1]
    D = w_heads.shape[1] // 2
    x = x.astype(w1p.dtype)

    # Largest tile <= requested that (a) is a multiple of 8 and (b) leaves at
    # least `min_grid` grid steps so dimension_semantics=("parallel",) can
    # shard the batch across both v7x TensorCores.
    tile_cap = max(8, _round_up(-(-B // min_grid), 8))
    tile_b = int(max(8, min(_round_up(int(tile_b), 8), tile_cap)))
    grid = (pl.cdiv(B, tile_b),)         # ragged last tile is masked by Pallas

    # Explicit VMEM budget: double-buffered streaming tiles + resident weights
    # + f32 temporaries (v5e defaults to only 16 MiB scoped VMEM).
    # NOTE: for very large D (real gene counts, v7x 64 MiB VMEM) add a
    # feature-tiling grid axis over D instead of shrinking tile_b below ~512.
    in_bytes = jnp.dtype(w1p.dtype).itemsize
    out_bytes = jnp.dtype(out_dtype).itemsize
    stream = 2 * tile_b * (Z * in_bytes + 2 * D * out_bytes)
    weights = 2 * (Z * Hp + Hp * 2 * D) * in_bytes + 2 * (Hp + 2 * D) * 4
    temps = 4 * tile_b * (Hp + 4 * 2 * D)
    vmem_limit = int(min(max(stream + weights + temps + (4 << 20), 32 << 20),
                         96 << 20))

    # probs must stay strictly inside (0, 1) *after* the cast to out_dtype
    # (1 - 1e-6 would round to exactly 1.0 in bf16).
    eps_hi = 1.0 - float(jnp.finfo(out_dtype).epsneg)
    kernel = functools.partial(decoder_nb_kernel, eps_lo=1e-6, eps_hi=eps_hi)

    x_spec = pl.BlockSpec((tile_b, Z), lambda i: (i, 0))
    w1_spec = pl.BlockSpec((Z, Hp), lambda i: (0, 0))      # constant block ->
    b1_spec = pl.BlockSpec((1, Hp), lambda i: (0, 0))      # stays resident,
    wh_spec = pl.BlockSpec((Hp, 2 * D), lambda i: (0, 0))  # no re-DMA per step
    bh_spec = pl.BlockSpec((1, 2 * D), lambda i: (0, 0))
    out_spec = pl.BlockSpec((tile_b, D), lambda i: (i, 0))

    tc, probs = pl.pallas_call(
        kernel,
        out_shape=(jax.ShapeDtypeStruct((B, D), out_dtype),
                   jax.ShapeDtypeStruct((B, D), out_dtype)),
        grid=grid,
        in_specs=[x_spec, w1_spec, b1_spec, wh_spec, bh_spec],
        out_specs=(out_spec, out_spec),
        compiler_params=pltpu.CompilerParams(
            dimension_semantics=("parallel",),
            vmem_limit_bytes=vmem_limit),
    )(x, w1p, b1p, w_heads, b_heads)
    return tc, probs


def _reference(x, w1, b1, w_tc, b_tc, w_p, b_p):
    h = jnp.maximum(x @ w1 + b1, 0.0)
    tc = jax.nn.softplus(h @ w_tc + b_tc)
    probs = jax.nn.sigmoid(h @ w_p + b_p)
    return tc, probs


if __name__ == "__main__":
    # Small, kernel-friendly shapes: batch=16, latent=32, hidden=64, features=128.
    B, Z, H, D = 16, 32, 64, 128

    key = jax.random.PRNGKey(0)
    kx, k1, k2, k3, k4, k5, k6 = jax.random.split(key, 7)

    x = jax.random.normal(kx, (B, Z), dtype=jnp.float32)

    # Deterministic synthetic parameters (fan-in scaled).
    w1 = jax.random.normal(k1, (Z, H), dtype=jnp.float32) / jnp.sqrt(Z)
    b1 = jax.random.normal(k2, (1, H), dtype=jnp.float32) * 0.01
    w_tc = jax.random.normal(k3, (H, D), dtype=jnp.float32) / jnp.sqrt(H)
    b_tc = jax.random.normal(k4, (1, D), dtype=jnp.float32) * 0.01
    w_p = jax.random.normal(k5, (H, D), dtype=jnp.float32) / jnp.sqrt(H)
    b_p = jax.random.normal(k6, (1, D), dtype=jnp.float32) * 0.01

    # --- f32 path (tight check against the pure-JAX reference) ---
    params_f32 = prepare_decoder_params(w1, b1, w_tc, b_tc, w_p, b_p)
    tc, probs = decoder_neg_binomial(x, *params_f32)
    jax.block_until_ready((tc, probs))

    tc_ref, probs_ref = _reference(x, w1, b1, w_tc, b_tc, w_p, b_p)
    assert tc.shape == (B, D) and probs.shape == (B, D)
    assert jnp.allclose(tc, tc_ref, atol=1e-5, rtol=1e-5)
    assert jnp.allclose(probs, probs_ref, atol=1e-5, rtol=1e-5)
    # NegativeBinomial parameter validity (tc > 0, 0 < probs < 1); note the
    # kernel clamps away from the boundaries, unlike the raw torch module.
    assert bool(jnp.all(tc > 0)) and bool(jnp.all((probs > 0) & (probs < 1)))

    # --- bf16 operand / bf16 output path (mem-bound fast path on v6e/v7x) ---
    params_bf16 = prepare_decoder_params(w1, b1, w_tc, b_tc, w_p, b_p,
                                         compute_dtype=jnp.bfloat16)
    tc_bf, probs_bf = decoder_neg_binomial(x, *params_bf16,
                                           out_dtype=jnp.bfloat16)
    jax.block_until_ready((tc_bf, probs_bf))
    assert tc_bf.dtype == jnp.bfloat16 and probs_bf.dtype == jnp.bfloat16
    assert jnp.allclose(tc_bf.astype(jnp.float32), tc_ref, atol=0.1, rtol=0.1)
    assert jnp.allclose(probs_bf.astype(jnp.float32), probs_ref, atol=0.05)
    assert bool(jnp.all(tc_bf > 0))
    assert bool(jnp.all((probs_bf > 0) & (probs_bf < 1)))

    # TODO(synk): torch.distributions.NegativeBinomial construction / .sample()
    # / .log_prob() are host-side distribution ops, not part of the forward
    # compute graph; only (tc, probs) — the forward() return value — is produced here.
    print("KERNEL_OK")
</pallas_src>

<mosaic_0001>
module attributes {stable_mosaic.version = 11 : i64} {
  func.func @decoder_nb_kernel(%arg0: i32, %arg1: memref<8x32xf32, #tpu.memory_space<vmem>>, %arg2: memref<32x128xf32, #tpu.memory_space<vmem>>, %arg3: memref<1x128xf32, #tpu.memory_space<vmem>>, %arg4: memref<128x256xf32, #tpu.memory_space<vmem>>, %arg5: memref<1x256xf32, #tpu.memory_space<vmem>>, %arg6: memref<8x128xf32, #tpu.memory_space<vmem>>, %arg7: memref<8x128xf32, #tpu.memory_space<vmem>>) attributes {dimension_semantics = [#tpu.dimension_semantics<parallel>], iteration_bounds = array<i64: 2>, scalar_prefetch = 0 : i64, scratch_operands = 0 : i64, tpu.core_type = #tpu.core_type<tc>, window_params = [{transform_indices = @transform_0, window_bounds = array<i64: 8, 32>}, {pipeline_mode = #tpu.pipeline_mode<synchronous>, transform_indices = @transform_1, window_bounds = array<i64: 32, 128>}, {pipeline_mode = #tpu.pipeline_mode<synchronous>, transform_indices = @transform_2, window_bounds = array<i64: 1, 128>}, {pipeline_mode = #tpu.pipeline_mode<synchronous>, transform_indices = @transform_3, window_bounds = array<i64: 128, 256>}, {pipeline_mode = #tpu.pipeline_mode<synchronous>, transform_indices = @transform_4, window_bounds = array<i64: 1, 256>}, {transform_indices = @transform_5, window_bounds = array<i64: 8, 128>}, {transform_indices = @transform_6, window_bounds = array<i64: 8, 128>}]} {
    %c0 = arith.constant 0 : index
    %c0_0 = arith.constant 0 : index
    %0 = vector.load %arg1[%c0, %c0_0] : memref<8x32xf32, #tpu.memory_space<vmem>>, vector<8x32xf32>
    %c0_1 = arith.constant 0 : index
    %c0_2 = arith.constant 0 : index
    %1 = vector.load %arg2[%c0_1, %c0_2] : memref<32x128xf32, #tpu.memory_space<vmem>>, vector<32x128xf32>
    %cst = arith.constant dense<0.000000e+00> : vector<8x128xf32>
    %2 = tpu.matmul %0, %1, %cst {dimension_numbers = #tpu.dot_dimension_numbers<[1], [0], [0], [1], [0, 0, 1, 1], [], []>} : vector<8x32xf32>, vector<32x128xf32>, vector<8x128xf32> -> vector<8x128xf32>
    %c0_3 = arith.constant 0 : index
    %c0_4 = arith.constant 0 : index
    %3 = vector.load %arg3[%c0_3, %c0_4] : memref<1x128xf32, #tpu.memory_space<vmem>>, vector<1x128xf32>
    %4 = vector.broadcast %3 : vector<1x128xf32> to vector<8x128xf32>
    %5 = arith.addf %2, %4 : vector<8x128xf32>
    %cst_5 = arith.constant 0.000000e+00 : f32
    %6 = vector.broadcast %cst_5 : f32 to vector<8x128xf32>
    %7 = arith.maximumf %5, %6 : vector<8x128xf32>
    %c0_6 = arith.constant 0 : index
    %c0_7 = arith.constant 0 : index
    %8 = vector.load %arg4[%c0_6, %c0_7] : memref<128x256xf32, #tpu.memory_space<vmem>>, vector<128x256xf32>
    %cst_8 = arith.constant dense<0.000000e+00> : vector<8x256xf32>
    %9 = tpu.matmul %7, %8, %cst_8 {dimension_numbers = #tpu.dot_dimension_numbers<[1], [0], [0], [1], [0, 0, 1, 1], [], []>} : vector<8x128xf32>, vector<128x256xf32>, vector<8x256xf32> -> vector<8x256xf32>
    %c0_9 = arith.constant 0 : index
    %c0_10 = arith.constant 0 : index
    %10 = vector.load %arg5[%c0_9, %c0_10] : memref<1x256xf32, #tpu.memory_space<vmem>>, vector<1x256xf32>
    %11 = vector.broadcast %10 : vector<1x256xf32> to vector<8x256xf32>
    %12 = arith.addf %9, %11 : vector<8x256xf32>
    %13 = vector.extract_strided_slice %12 {offsets = [0, 0], sizes = [8, 128], strides = [1, 1]} : vector<8x256xf32> to vector<8x128xf32>
    %14 = vector.extract_strided_slice %12 {offsets = [0, 128], sizes = [8, 128], strides = [1, 1]} : vector<8x256xf32> to vector<8x128xf32>
    %15 = math.absf %12 : vector<8x256xf32>
    %cst_11 = arith.constant 0.000000e+00 : f32
    %16 = vector.broadcast %cst_11 : f32 to vector<8x256xf32>
    %17 = arith.subf %16, %15 : vector<8x256xf32>
    %18 = math.exp %17 : vector<8x256xf32>
    %19 = vector.extract_strided_slice %18 {offsets = [0, 0], sizes = [8, 128], strides = [1, 1]} : vector<8x256xf32> to vector<8x128xf32>
    %20 = vector.extract_strided_slice %18 {offsets = [0, 128], sizes = [8, 128], strides = [1, 1]} : vector<8x256xf32> to vector<8x128xf32>
    %cst_12 = arith.constant 0.000000e+00 : f32
    %21 = vector.broadcast %cst_12 : f32 to vector<8x128xf32>
    %22 = arith.maximumf %13, %21 : vector<8x128xf32>
    %23 = math.log1p %19 : vector<8x128xf32>
    %24 = arith.addf %22, %23 : vector<8x128xf32>
    %cst_13 = arith.constant 9.99999997E-7 : f32
    %25 = vector.broadcast %cst_13 : f32 to vector<8x128xf32>
    %26 = arith.maximumf %24, %25 : vector<8x128xf32>
    %cst_14 = arith.constant 0.000000e+00 : f32
    %27 = vector.broadcast %cst_14 : f32 to vector<8x128xf32>
    %28 = arith.cmpf oge, %14, %27 : vector<8x128xf32>
    %cst_15 = arith.constant 1.000000e+00 : f32
    %29 = vector.broadcast %cst_15 : f32 to vector<8x128xf32>
    %30 = arith.select %28, %29, %20 : vector<8x128xi1>, vector<8x128xf32>
    %cst_16 = arith.constant 1.000000e+00 : f32
    %31 = vector.broadcast %cst_16 : f32 to vector<8x128xf32>
    %32 = arith.addf %31, %20 : vector<8x128xf32>
    %33 = arith.divf %30, %32 : vector<8x128xf32>
    %cst_17 = arith.constant 9.99999997E-7 : f32
    %cst_18 = arith.constant 0.99999994 : f32
    %34 = vector.broadcast %cst_17 : f32 to vector<8x128xf32>
    %35 = arith.maximumf %34, %33 : vector<8x128xf32>
    %36 = vector.broadcast %cst_18 : f32 to vector<8x128xf32>
    %37 = arith.minimumf %36, %35 : vector<8x128xf32>
    %c0_19 = arith.constant 0 : index
    %c0_20 = arith.constant 0 : index
    %38 = vector.load %arg6[%c0_19, %c0_20] : memref<8x128xf32, #tpu.memory_space<vmem>>, vector<8x128xf32>
    tpu.vector_store %arg6[%c0_19, %c0_20], %26 {strides = array<i32>} : memref<8x128xf32, #tpu.memory_space<vmem>>, vector<8x128xf32>,
    %c0_21 = arith.constant 0 : index
    %c0_22 = arith.constant 0 : index
    %39 = vector.load %arg7[%c0_21, %c0_22] : memref<8x128xf32, #tpu.memory_space<vmem>>, vector<8x128xf32>
    tpu.vector_store %arg7[%c0_21, %c0_22], %37 {strides = array<i32>} : memref<8x128xf32, #tpu.memory_space<vmem>>, vector<8x128xf32>,
    return
  }
  func.func @transform_0(%arg0: i32) -> (i32, i32) {
    %c0_i32 = arith.constant 0 : i32
    %c0_i32_0 = arith.constant 0 : i32
    return %arg0, %c0_i32 : i32, i32
  }
  func.func @transform_1(%arg0: i32) -> (i32, i32) {
    %c0_i32 = arith.constant 0 : i32
    %c0_i32_0 = arith.constant 0 : i32
    %c0_i32_1 = arith.constant 0 : i32
    return %c0_i32, %c0_i32_0 : i32, i32
  }
  func.func @transform_2(%arg0: i32) -> (i32, i32) {
    %c0_i32 = arith.constant 0 : i32
    %c0_i32_0 = arith.constant 0 : i32
    %c0_i32_1 = arith.constant 0 : i32
    return %c0_i32, %c0_i32_0 : i32, i32
  }
  func.func @transform_3(%arg0: i32) -> (i32, i32) {
    %c0_i32 = arith.constant 0 : i32
    %c0_i32_0 = arith.constant 0 : i32
    %c0_i32_1 = arith.constant 0 : i32
    return %c0_i32, %c0_i32_0 : i32, i32
  }
  func.func @transform_4(%arg0: i32) -> (i32, i32) {
    %c0_i32 = arith.constant 0 : i32
    %c0_i32_0 = arith.constant 0 : i32
    %c0_i32_1 = arith.constant 0 : i32
    return %c0_i32, %c0_i32_0 : i32, i32
  }
  func.func @transform_5(%arg0: i32) -> (i32, i32) {
    %c0_i32 = arith.constant 0 : i32
    %c0_i32_0 = arith.constant 0 : i32
    return %arg0, %c0_i32 : i32, i32
  }
  func.func @transform_6(%arg0: i32) -> (i32, i32) {
    %c0_i32 = arith.constant 0 : i32
    %c0_i32_0 = arith.constant 0 : i32
    return %arg0, %c0_i32 : i32, i32
  }
}

</mosaic_0001>

<bundles_post_ra>
// kernel: decoder_neg_binomial.1
= control target key start
LH: loop header
LB: loop body
LE: loop exit
PB: predicated region body
PF: predicated region fallthrough
CT: control target
= control target key end

     0   :  { %12 = vsyncpa [#allocation3], 0  ;;  %s1361_s0 = inlined_call_operand.hbm [shape: f32[16,32], index: 0, kind: input, shape index: {}]   ;;  %s1362_s1 = inlined_call_operand.hbm [shape: f32[32,128], index: 1, kind: input, shape index: {}]   ;;  %s1363_s2 = inlined_call_operand.vmem [shape: f32[1,128], index: 2, kind: input, shape index: {}]   ;;  %s1364_s3 = inlined_call_operand.hbm [shape: f32[128,256], index: 3, kind: input, shape index: {}]   ;;  %s1365_s4 = inlined_call_operand.vmem [shape: f32[1,256], index: 4, kind: input, shape index: {}]   ;;  %s1366_s5 = inlined_call_operand.hbm [shape: f32[16,128], index: 5, kind: output, shape index: {0}]   ;;  %s1367_s6 = inlined_call_operand.hbm [shape: f32[16,128], index: 6, kind: output, shape index: {1}]  }
   0x1   :  { %14 = vsyncpa [#allocation3 + $0x1], 0 }
   0x2   :  { %15 = vsyncpa [#allocation6], 0 }
   0x3   :  { %16 = vsyncpa [#allocation4], 0 }
   0x4   :  { %18 = vsyncpa [#allocation4 + $0x1], 0 }
   0x5   :  { %19 = vsyncpa [#allocation10], 0 }
   0x6   :  { %21 = vsyncpa [#allocation10 + $0x1], 0  ;;  %s1090_s21 = smov 0   ;;  %s1092_s22 = smov 0  }
   0x7   :  { %s1094_s23 = smov 0   ;;  %s1096_s24 = smov 0  }
   0x8 LB: > { %s1111_s25 = sadd.s32 4294967295, %s1041_s24   ;;  %s691_s26 = sadd.s32 4294967294, %s1041_s24   ;;  %s1041_s24 = sphi %s1096_s24, %s1387_s24   ;;  %s1037_s23 = sphi %s1094_s23, %s1386_s23   ;;  %s1033_s22 = sphi %s1092_s22, %s1385_s22   ;;  %s1029_s21 = sphi %s1090_s21, %s1384_s21  }
   0x9   : > { %p47_p0 = scmp.ne.s32.totalorder %s1033_s22, %s1029_s21  ;;  %p1368_p1 = scmp.eq.s32.totalorder %s1111_s25, 0 }
   0xa   : > { %p161_p3 = scmp.eq.s32.totalorder %s691_s26, 1  ;;  %p692_p5 = scmp.ge.s32.totalorder %s1041_s24, 1 }
   0xb   : > { %p1120_p4 = por %p1368_p1, %p47_p0  ;;  %p194_p7 = scmp.lt.s32.totalorder %s1041_s24, 3 }
   0xc   : > { %p1125_p6 = por %p161_p3, %p47_p0  ;;  %s1043_s30 = smov [#allocation5]  }
   0xd   : > { %s1371_s27 = scalar_select %p1120_p4, 1, 0 }
   0xe   : > { %s1372_s28 = scalar_select %p1125_p6, 1, 0 }
   0xf   : > { %p1130_p8 = pnand %p692_p5, %p194_p7  ;;  %s206_s7 = sshll.u32 %s1043_s30, 4  ;;  %s1134_s7 = int_to_ptr.vmem [resolvable:$true] %s206_s7 }
  0x10   : > { %s1044_s9 = smov [#allocation7]   ;;  %s853_s13 = scalar_lea.hbm %s1362_s1, 512 }
  0x11   : > { %p780_p9 = pneg %p1130_p8  ;;  %s222_s10 = sshll.u32 %s1044_s9, 4  ;;  %s1145_s10 = int_to_ptr.vmem [resolvable:$true] %s222_s10 }
  0x12   : > { %p854_p12 = scmp.ne.s32.totalorder %s1362_s1, %s853_s13  ;;  %p860_p5 = scmp.lt.u32.totalorder %s853_s13, %s1362_s1 }
  0x13   : > { %p1141_p11 = pnand %p780_p9, %p1368_p1 }
  0x15   : > { %p855_p13 = pneg %p1141_p11 }
  0x17   : > { %p856_p0 = pnand %p855_p13, %p854_p12 }
  0x19   : > { %p857_p3 = pneg %p856_p0 }
  0x1b   : > { %p862_p7 = pnand %p860_p5, %p857_p3 }
  0x1d   : > { %865 = shalt.err (!%p862_p7)
}
  0x1e   : > { %s866_s18 = scalar_lea.vmem %s1134_s7, 512  ;;  %p874_p2 = scmp.lt.s32.totalorder %s1134_s7, %s1134_s7 }
  0x1f   : > { %p867_p9 = scmp.ne.s32.totalorder %s1134_s7, %s866_s18  ;;  %p875_p12 = scmp.lt.s32.totalorder %s866_s18, %s866_s18 }
  0x21   : > { %p869_p10 = pnand %p867_p9, %p855_p13  ;;  %p876_p0 = por %p875_p12, %p874_p2 }
  0x23   : > { %p870_p1 = pneg %p869_p10 }
  0x25   : > { %p877_p6 = pnand %p876_p0, %p870_p1 }
  0x27   : > { %880 = shalt.err (!%p877_p6)
}
  0x28   : > { %s1045_s19 = smov 128   ;;  %s1046_s20 = smov 8  }
  0x29   : > { %783 = dma.hbm_to_vmem [thread:$0]  (!%p1141_p11), %s1362_s1, 512, %s1134_s7, [#allocation6], %s1045_s19, %s1045_s19, %s1046_s20  }
  0x2a   : > { %s881_s12 = scalar_lea.hbm %s1364_s3, 4096 }
  0x2b   : > { %p882_p2 = scmp.ne.s32.totalorder %s1364_s3, %s881_s12  ;;  %p888_p10 = scmp.lt.u32.totalorder %s881_s12, %s1364_s3 }
  0x2d   : > { %p884_p1 = pnand %p882_p2, %p855_p13 }
  0x2f   : > { %p885_p6 = pneg %p884_p1 }
  0x31   : > { %p890_p3 = pnand %p888_p10, %p885_p6 }
  0x33   : > { %893 = shalt.err (!%p890_p3)
}
  0x34   : > { %s894_s7 = scalar_lea.vmem %s1145_s10, 4096  ;;  %p902_p12 = scmp.lt.s32.totalorder %s1145_s10, %s1145_s10 }
  0x35   : > { %p895_p5 = scmp.ne.s32.totalorder %s1145_s10, %s894_s7  ;;  %p903_p0 = scmp.lt.s32.totalorder %s894_s7, %s894_s7 }
  0x37   : > { %p897_p7 = pnand %p895_p5, %p855_p13  ;;  %p904_p2 = por %p903_p0, %p902_p12 }
  0x39   : > { %p898_p9 = pneg %p897_p7 }
  0x3b   : > { %p905_p1 = pnand %p904_p2, %p898_p9 }
  0x3d   : > { %908 = shalt.err (!%p905_p1)
}
  0x3e   : > { %s1047_s17 = smov 256   ;;  %s1048_s18 = smov 16  }
  0x3f   : > { %786 = dma.hbm_to_vmem [thread:$0]  (!%p1141_p11), %s1364_s3, 4096, %s1145_s10, [#allocation6], %s1047_s17, %s1047_s17, %s1048_s18  }
  0x40   : > { %s1200_s26 = sadd.s32 1, %s1041_s24   ;;  %s34_s9 = sadd.s32 1, %s1037_s23 }
  0x41   : > { %s31_s30 = ssub.s32 %s1041_s24, %s1200_s26  ;;  %p41_p6 = scmp.ne.s32.totalorder %s1037_s23, %s1033_s22 }
  0x42   : > { %p32_p13 = scmp.eq.s32.totalorder %s31_s30, 0  ;;  %p42_p10 = scmp.eq.s32.totalorder %s1041_s24, 0 }
  0x43   : > { %p1375_p5 = scmp.eq.s32.totalorder %s1111_s25, 1  ;;  %p800_p9 = scmp.lt.s32.totalorder %s1041_s24, 2 }
  0x44   : > { %s1209_s11 = scalar_select %p32_p13, %s1037_s23, %s34_s9  }
  0x45   : > { %p43_p3 = por %p42_p10, %p41_p6  ;;  %p1213_p7 = por %p1375_p5, %p41_p6 }
  0x46   : > { %s239_s8 = sand.u32 1, %s1037_s23   ;;  %s697_s10 = sshll.u32 %s1041_s24, 7 }
  0x47   : > { %s1376_s12 = scalar_select %p1213_p7, 1, 0 }
  0x48   : > { %s696_s13 = sshll.u32 %s239_s8, 3  ;;  %s1223_s16 = scalar_lea.hbm %s1361_s0, %s697_s10 }
  0x49   : > { %s243_s7 = scalar_lea.vmem [#allocation2], %s696_s13  ;;  %p1227_p11 = pnand %p800_p9, %p43_p3 }
  0x4a   : > { %s250_s17 = sshll.u32 %s243_s7, 4  ;;  %s240_s19 = scalar_lea.sflag [#allocation3], %s239_s8  ;;  %s1225_s17 = int_to_ptr.vmem [resolvable:$true] %s250_s17 }
  0x4b   : > { %s909_s20 = scalar_lea.hbm %s1223_s16, 128  ;;  %p911_p0 = pneg %p1227_p11 }
  0x4c   : > { %p910_p12 = scmp.ne.s32.totalorder %s1223_s16, %s909_s20  ;;  %s914_s13 = scalar_lea.hbm %s1361_s0, 256 }
  0x4d   : > { %p915_p13 = scmp.lt.u32.totalorder %s1223_s16, %s1361_s0  ;;  %p916_p6 = scmp.lt.u32.totalorder %s914_s13, %s909_s20 }
  0x4e   : > { %p912_p2 = pnand %p911_p0, %p910_p12  ;;  %p918_p3 = scmp.lt.u32.totalorder %s909_s20, %s1223_s16 }
  0x4f   : > { %p917_p10 = por %p916_p6, %p915_p13 }
  0x50   : > { %p913_p1 = pneg %p912_p2 }
  0x51   : > { %p919_p5 = por %p918_p3, %p917_p10 }
  0x53   : > { %p920_p9 = pnand %p919_p5, %p913_p1 }
  0x55   : > { %923 = shalt.err (!%p920_p9)
}
  0x56   : > { %s924_s8 = scalar_lea.vmem %s1225_s17, 128  ;;  %s1049_s15 = smov [#allocation2]  }
  0x57   : > { %p925_p12 = scmp.ne.s32.totalorder %s1225_s17, %s924_s8  ;;  %s929_s7 = sshll.u32 %s1049_s15, 4  ;;  %s930_s7 = int_to_ptr.vmem [resolvable:$false] %s929_s7 }
  0x58   : > { %s931_s30 = scalar_lea.vmem %s930_s7, 256  ;;  %p932_p4 = scmp.lt.s32.totalorder %s1225_s17, %s930_s7 }
  0x59   : > { %p927_p2 = pnand %p925_p12, %p911_p0  ;;  %p933_p13 = scmp.lt.s32.totalorder %s931_s30, %s924_s8 }
  0x5b   : > { %p928_p7 = pneg %p927_p2  ;;  %p934_p6 = por %p933_p13, %p932_p4 }
  0x5d   : > { %p935_p10 = pnand %p934_p6, %p928_p7 }
  0x5f   : > { %938 = shalt.err (!%p935_p10)
}
  0x60   : > { %790 = dma.hbm_to_vmem [thread:$0]  (!%p1227_p11), %s1223_s16, 128, %s1225_s17, %s240_s19  }
  0x61   : > { %259 = sbr.rel (%p1130_p8) target bundleno = 622 (0x26e), region = 40  ;;  %s1259_s20 = sand.u32 (!%p1130_p8), 1, %s1033_s22  }
  0x62   : > { %s1262_s9 = sshll.u32 (!%p1130_p8), %s1259_s20, 3  ;;  %s262_s13 = scalar_lea.sflag (!%p1130_p8), [#allocation3], %s1259_s20 }
  0x63   : > { %s265_s10 = scalar_lea.vmem (!%p1130_p8), [#allocation2], %s1262_s9  ;;  %p1378_p4 = scmp.ne.s32.totalorder (!%p1130_p8), %s1371_s27, 0 }
  0x68   : > { %1012 = dma.done.wait (%p1378_p4), %s262_s13, 128  }
  0x69   : > { %1014 = vsyncadd (%p1378_p4), %s262_s13, 4294967168  ;;  %p1379_p7 = scmp.eq.s32.totalorder %s1111_s25, 0 }
  0x6b   : > { %1016 = dma.done.wait (%p1379_p7), [#allocation6], 4608   ;;  %p1380_p8 = pmov %p1379_p7 }
  0x6c   : > { %v1050_v0 = vmov 0.0|0.0   ;;  %vm1051_vm0 = vmmov 0   ;;  %v1052_v1 = vmov 0.0   ;;  %v308_v2 = vld [vmem:[#allocation5] sm:$0xff]  ;;  %v309_v3 = vld [vmem:[#allocation5 + $0x8] sm:$0xff]  ;;  %v310_v4 = vld [vmem:[#allocation5 + $0x10] sm:$0xff]  ;;  %v428_v62 = vlaneseq }
  0x6d   : > { %1018 = vsyncadd (%p1380_p8), [#allocation6], 4294962688  ;;  %728 = vmatprep.subr.bf16.mxu0 %v1050_v0  ;;  %725 = vmatprep.mubr.msk.f32.mxu0 %vm1051_vm0, %v1052_v1  ;;  %v729_v5 = vpack.c.bf16 %v309_v3, %v308_v2  ;;  %v311_v6 = vld [vmem:[#allocation5 + $0x18] sm:$0xff]  ;;  %v395_v7 = vld [vmem:[#allocation7 + $0x8] sm:$0xff]  ;;  %vm319_vm1 = vcmask 261120   ;;  %s708_s18 = sshll.u32 %s1111_s25, 7 }
  0x6e   : > { %502 = vmatprep.mubr.f32.mxu1 %v1052_v1  ;;  %v397_v8 = vld [vmem:[#allocation7 + $0x18] sm:$0xff]  ;;  %v394_v9 = vld [vmem:[#allocation7] sm:$0xff]  ;;  %v396_v10 = vld [vmem:[#allocation7 + $0x10] sm:$0xff]  ;;  %v732_v11 = vpack.c.bf16 %v311_v6, %v310_v4  ;;  %v429_v63 = vshrl.u32 %v428_v62, 7  ;;  %s299_s19 = scalar_lea.vmem [#allocation8], %s1262_s9  ;;  %s306_s8 = scalar_lea.vmem [#allocation9], %s1262_s9 }
  0x6f   : > { %730 = vmatpush3.bf16.msra.mxu0 %v729_v5  ;;  %v734_v12 = vpack.c.bf16 %v397_v8, %v395_v7  ;;  %v736_v13 = vpack.c.bf16 %v396_v10, %v394_v9  ;;  %v399_v14 = vld [vmem:[#allocation7 + $0x28] sm:$0xff]  ;;  %v401_v15 = vld [vmem:[#allocation7 + $0x38] sm:$0xff]  ;;  %v398_v16 = vld [vmem:[#allocation7 + $0x20] sm:$0xff]  ;;  %s557_s14 = sshll.u32 %s299_s19, 4  ;;  %s570_s15 = sshll.u32 %s306_s8, 4  ;;  %s1290_s14 = int_to_ptr.vmem [resolvable:$true] %s557_s14  ;;  %s1297_s15 = int_to_ptr.vmem [resolvable:$true] %s570_s15 }
  0x70   : > { %731 = vmatprep.subr.bf16.mxu0 %v1050_v0  ;;  %v738_v17 = vpack.c.bf16 %v401_v15, %v399_v14  ;;  %v400_v18 = vld [vmem:[#allocation7 + $0x30] sm:$0xff]  ;;  %v403_v19 = vld [vmem:[#allocation7 + $0x48] sm:$0xff]  ;;  %v405_v20 = vld [vmem:[#allocation7 + $0x58] sm:$0xff]  ;;  %v430_v0 = vsub.s32 0, %v429_v63  ;;  %v434_v2 = vsub.s32 1, %v429_v63  ;;  %s1288_s13 = scalar_lea.hbm %s1366_s5, %s708_s18  ;;  %s1295_s27 = scalar_lea.hbm %s1367_s6, %s708_s18 }
  0x71   : > { %735 = vmatprep.subr.bf16.mxu1 %v734_v12  ;;  %v740_v21 = vpack.c.bf16 %v400_v18, %v398_v16  ;;  %v307_v22 = vld [vmem:[%s265_s10] sm:$0xff]  ;;  %v742_v23 = vpack.c.bf16 %v405_v20, %v403_v19  ;;  %v402_v24 = vld [vmem:[#allocation7 + $0x40] sm:$0xff]  ;;  %v407_v26 = vld [vmem:[#allocation7 + $0x68] sm:$0xff]  ;;  %s539_s9 = scalar_lea.sflag [#allocation4], %s1259_s20  ;;  %s939_s29 = scalar_lea.vmem %s1290_s14, 128 }
  0x72   : > { %737 = vmatpush1.bf16.msra.mxu1 %v736_v13  ;;  %v404_v25 = vld [vmem:[#allocation7 + $0x50] sm:$0xff]  ;;  %v409_v27 = vld [vmem:[#allocation7 + $0x78] sm:$0xff]  ;;  %v406_v30 = vld [vmem:[#allocation7 + $0x60] sm:$0xff]  ;;  %p940_p11 = scmp.ne.s32.totalorder %s1290_s14, %s939_s29  ;;  %p1381_p0 = scmp.ne.s32.totalorder %s1376_s12, 0 }
  0x73   : > { %733 = vmatpush3.bf16.msra.mxu0 %v732_v11  ;;  %739 = vmatprep.subr.bf16.mxu1 %v738_v17  ;;  %v744_v28 = vpack.c.bf16 %v404_v25, %v402_v24  ;;  %v746_v29 = vpack.c.bf16 %v409_v27, %v407_v26  ;;  %v408_v31 = vld [vmem:[#allocation7 + $0x70] sm:$0xff]  ;;  %v411_v32 = vld [vmem:[#allocation7 + $0x88] sm:$0xff]  ;;  %v413_v33 = vld [vmem:[#allocation7 + $0x98] sm:$0xff]  ;;  %s1053_s16 = smov [#allocation8]  }
  0x74   : > { %v748_v34 = vpack.c.bf16 %v408_v31, %v406_v30  ;;  %v750_v35 = vpack.c.bf16 %v413_v33, %v411_v32  ;;  %v410_v36 = vld [vmem:[#allocation7 + $0x80] sm:$0xff]  ;;  %v412_v37 = vld [vmem:[#allocation7 + $0x90] sm:$0xff]  ;;  %v415_v38 = vld [vmem:[#allocation7 + $0xa8] sm:$0xff]  ;;  %p941_p1 = pnand %p940_p11, %p1381_p0  ;;  %s943_s17 = sshll.u32 %s1053_s16, 4  ;;  %s944_s17 = int_to_ptr.vmem [resolvable:$false] %s943_s17 }
  0x75   : > { %v417_v39 = vld [vmem:[#allocation7 + $0xb8] sm:$0xff]  ;;  %v752_v40 = vpack.c.bf16 %v412_v37, %v410_v36  ;;  %v414_v42 = vld [vmem:[#allocation7 + $0xa0] sm:$0xff]  ;;  %v416_v43 = vld [vmem:[#allocation7 + $0xb0] sm:$0xff]  ;;  %s945_s7 = scalar_lea.vmem %s944_s17, 256  ;;  %p946_p5 = scmp.lt.s32.totalorder %s1290_s14, %s944_s17 }
  0x76   : > { %726 = vmatmul.mubr.msk.f32.vlgmr.msra.gmra.mrb[0].mxu0 %vm319_vm1, %v307_v22  ;;  %741 = vmatpush1.bf16.msra.mxu1 %v740_v21  ;;  %v754_v41 = vpack.c.bf16 %v417_v39, %v415_v38  ;;  %v419_v44 = vld [vmem:[#allocation7 + $0xc8] sm:$0xff]  ;;  %v421_v45 = vld [vmem:[#allocation7 + $0xd8] sm:$0xff]  ;;  %v756_v46 = vpack.c.bf16 %v416_v43, %v414_v42  ;;  %v418_v48 = vld [vmem:[#allocation7 + $0xc0] sm:$0xff]  ;;  %p942_p3 = pneg %p941_p1  ;;  %p947_p9 = scmp.lt.s32.totalorder %s945_s7, %s939_s29 }
  0x77   : > { %743 = vmatprep.subr.bf16.mxu1 %v742_v23  ;;  %v758_v47 = vpack.c.bf16 %v421_v45, %v419_v44  ;;  %v420_v49 = vld [vmem:[#allocation7 + $0xd0] sm:$0xff]  ;;  %v423_v51 = vld [vmem:[#allocation7 + $0xe8] sm:$0xff]  ;;  %v425_v52 = vld [vmem:[#allocation7 + $0xf8] sm:$0xff] }
  0x78   : > { %v760_v50 = vpack.c.bf16 %v420_v49, %v418_v48  ;;  %v762_v53 = vpack.c.bf16 %v425_v52, %v423_v51  ;;  %v422_v54 = vld [vmem:[#allocation7 + $0xe0] sm:$0xff]  ;;  %v424_v55 = vld [vmem:[#allocation7 + $0xf0] sm:$0xff]  ;;  %p948_p12 = por %p947_p9, %p946_p5 }
  0x79   : > { %v764_v56 = vpack.c.bf16 %v424_v55, %v422_v54  ;;  %v704_v57 = vld [vmem:[%s1363_s2] ss:$0 sm:$0xff] }
  0x7a   : > { %745 = vmatpush1.bf16.msra.mxu1 %v744_v28  ;;  %v426_v1 = vld [vmem:[%s1365_s4] sm:$0x3]  ;;  %p949_p2 = pnand %p948_p12, %p942_p3 }
  0x7b   : > { %747 = vmatprep.subr.bf16.mxu1 %v746_v29  ;;  %v431_v3 = vrot.slane %v426_v1, %v430_v0  ;;  %v435_v4 = vrot.slane %v426_v1, %v434_v2 }
  0x7e   : > { %749 = vmatpush1.bf16.msra.mxu1 %v748_v34 }
  0x7f   : > { %751 = vmatprep.subr.bf16.mxu1 %v750_v35 }
  0x82   : > { %753 = vmatpush1.bf16.msra.mxu1 %v752_v40 }
  0x83   : > { %755 = vmatprep.subr.bf16.mxu1 %v754_v41 }
  0x86   : > { %757 = vmatpush1.bf16.msra.mxu1 %v756_v46 }
  0x87   : > { %759 = vmatprep.subr.bf16.mxu1 %v758_v47 }
  0x8a   : > { %761 = vmatpush1.bf16.msra.mxu1 %v760_v50 }
  0x8b   : > { %763 = vmatprep.subr.bf16.mxu1 %v762_v53 }
  0x8e   : > { %765 = vmatpush1.bf16.msra.mxu1 %v764_v56 }
 0x149   : > { %v389_v58 = vpop.f32.mrb[0].mxu0 }
 0x14a   : > { %v390_v59 = vadd.f32 %v704_v57, %v389_v58  ;;  %v727_v60 = vpop.f32.mrb[1].mxu0 }
 0x14c   : > { %v393_v61 = vmax.f32 %v390_v59, 0.0 }
 0x14e   : > { %503 = vmatmul.mubr.f32.vlgmr.msra.gmra.mrb[0].mxu1 %v393_v61 }
 0x221   : > { %v504_v5 = vpop.f32.mrb[0].mxu1 }
 0x222   : > { %v505_v6 = vadd.f32 %v504_v5, %v431_v3  ;;  %v506_v7 = vpop.f32.mrb[1].mxu1 }
 0x223   : > { %v507_v8 = vadd.f32 %v506_v7, %v435_v4 }
 0x224   : > { %v509_v9 = vand.u32 2147483647, %v505_v6  ;;  %v517_v27 = vmax.f32 %v505_v6, 0.0 }
 0x225   : > { %v510_v10 = vand.u32 2147483647, %v507_v8  ;;  %vm529_vm2 = vcmp.ge.f32.partialorder %v507_v8, 0.0 }
 0x226   : > { %v511_v11 = vsub.f32 0.0, %v509_v9 }
 0x227   : > { %v512_v12 = vsub.f32 0.0, %v510_v10 }
 0x228   : > { %v513_v13 = vmul.f32 1.442695, %v511_v11 }
 0x229   : > { %v515_v14 = vmul.f32 1.442695, %v512_v12 }
 0x22a   : > { %845 = vpow2.f32 %v513_v13 }
 0x22b   : > { %847 = vpow2.f32 %v515_v14 }
 0x234   : > { %v846_v15 = vpop.eup %845 }
 0x235   : > { %v848_v16 = vpop.eup %847  ;;  %v518_v17 = vadd.f32 1.0, %v846_v15  ;;  %v521_v19 = vmul.f32 -0.5, %v846_v15  ;;  %v524_v21 = vand.u32 2147483647, %v846_v15 }
 0x236   : > { %v531_v18 = vadd.f32 1.0, %v848_v16  ;;  %v530_v26 = vsel %vm529_vm2, 1.0, %v848_v16 }
 0x237   : > { %849 = vlog2.f32 %v518_v17  ;;  %v522_v20 = vadd.f32 1.0, %v521_v19  ;;  %vm525_vm3 = vcmp.lt.f32.partialorder %v524_v21, 0.0004427343 }
 0x238   : > { %851 = vrcp.f32 %v531_v18 }
 0x239   : > { %v523_v25 = vmul.f32 %v846_v15, %v522_v20 }
 0x241   : > { %v850_v22 = vpop.eup %849 }
 0x242   : > { %v852_v23 = vpop.eup %851  ;;  %v520_v24 = vmul.f32 0.6931472, %v850_v22 }
 0x243   : > { %v533_v28 = vmul.f32 %v852_v23, %v530_v26 }
 0x244   : > { %v526_v29 = vsel %vm525_vm3, %v523_v25, %v520_v24 }
 0x245   : > { %v527_v30 = vadd.f32 %v526_v29, %v517_v27  ;;  %v534_v31 = vmax.f32 %v533_v28, 1e-06 }
 0x247   : > { %v528_v32 = vmax.f32 %v527_v30, 1e-06  ;;  %v535_v33 = vmin.f32 %v534_v31, 0.99999994 }
 0x249   : > { %536 = vst [vmem:[%s299_s19] sm:$0xff] %v528_v32  ;;  %537 = vst [vmem:[%s306_s8] sm:$0xff] %v535_v33 }
 0x24a   : > { %952 = shalt.err (!%p949_p2)
}
 0x24b   : > { %s953_s18 = scalar_lea.hbm %s1288_s13, 128  ;;  %s957_s30 = scalar_lea.hbm %s1366_s5, 256 }
 0x24c   : > { %p954_p13 = scmp.ne.s32.totalorder %s1288_s13, %s953_s18  ;;  %p958_p4 = scmp.lt.u32.totalorder %s1288_s13, %s1366_s5 }
 0x24d   : > { %p959_p7 = scmp.lt.u32.totalorder %s957_s30, %s953_s18  ;;  %p961_p11 = scmp.lt.u32.totalorder %s953_s18, %s1288_s13 }
 0x24e   : > { %p955_p6 = pnand %p954_p13, %p1381_p0 }
 0x24f   : > { %p960_p8 = por %p959_p7, %p958_p4 }
 0x250   : > { %p956_p10 = pneg %p955_p6 }
 0x251   : > { %p962_p1 = por %p961_p11, %p960_p8 }
 0x253   : > { %p963_p3 = pnand %p962_p1, %p956_p10 }
 0x255   : > { %966 = shalt.err (!%p963_p3)
}
 0x256   : > { %776 = dma.vmem_to_hbm [thread:$0]  (%p1381_p0), %s1290_s14, 128, %s1288_s13, %s539_s9  }
 0x257   : > { %s544_s29 = scalar_lea.sflag [#allocation10], %s1259_s20  ;;  %s967_s16 = scalar_lea.vmem %s1297_s15, 128 }
 0x258   : > { %p968_p5 = scmp.ne.s32.totalorder %s1297_s15, %s967_s16  ;;  %s1054_s17 = smov [#allocation9]  }
 0x259   : > { %s971_s7 = sshll.u32 %s1054_s17, 4  ;;  %s972_s7 = int_to_ptr.vmem [resolvable:$false] %s971_s7 }
 0x25a   : > { %p969_p9 = pnand %p968_p5, %p1381_p0  ;;  %s973_s18 = scalar_lea.vmem %s972_s7, 256 }
 0x25b   : > { %p974_p2 = scmp.lt.s32.totalorder %s1297_s15, %s972_s7  ;;  %p975_p13 = scmp.lt.s32.totalorder %s973_s18, %s967_s16 }
 0x25c   : > { %p970_p12 = pneg %p969_p9 }
 0x25d   : > { %p976_p6 = por %p975_p13, %p974_p2 }
 0x25f   : > { %p977_p10 = pnand %p976_p6, %p970_p12 }
 0x261   : > { %980 = shalt.err (!%p977_p10)
}
 0x262   : > { %s981_s20 = scalar_lea.hbm %s1295_s27, 128  ;;  %s985_s9 = scalar_lea.hbm %s1367_s6, 256 }
 0x263   : > { %p982_p4 = scmp.ne.s32.totalorder %s1295_s27, %s981_s20  ;;  %p986_p11 = scmp.lt.u32.totalorder %s1295_s27, %s1367_s6 }
 0x264   : > { %p987_p1 = scmp.lt.u32.totalorder %s985_s9, %s981_s20  ;;  %p989_p5 = scmp.lt.u32.totalorder %s981_s20, %s1295_s27 }
 0x265   : > { %p983_p7 = pnand %p982_p4, %p1381_p0 }
 0x266   : > { %p988_p3 = por %p987_p1, %p986_p11 }
 0x267   : > { %p984_p8 = pneg %p983_p7 }
 0x268   : > { %p990_p9 = por %p989_p5, %p988_p3 }
 0x26a   : > { %p991_p12 = pnand %p990_p9, %p984_p8 }
 0x26c   : > { %994 = shalt.err (!%p991_p12)
}
 0x26d   : > { %777 = dma.vmem_to_hbm [thread:$0]  (%p1381_p0), %s1297_s15, 128, %s1295_s27, %s544_s29  }
 0x26e PF: > { %s582_s30 = sand.u32 1, %s1029_s21   ;;  %p1382_p2 = scmp.ne.s32.totalorder %s1372_s28, 0 }
 0x26f   : > { %p1383_p13 = scmp.ge.s32.totalorder %s1041_s24, 2  ;;  %s583_s10 = scalar_lea.sflag [#allocation4], %s582_s30 }
 0x271   : > { %p792_p6 = pnand %p1383_p13, %p1382_p2 }
 0x273   : > { %1020 = dma.done.wait (!%p792_p6), %s583_s10, 128  }
 0x274   : > { %1022 = vsyncadd (!%p792_p6), %s583_s10, 4294967168  ;;  %s592_s25 = scalar_lea.sflag [#allocation10], %s582_s30 }
 0x275   : > { %1024 = dma.done.wait (!%p792_p6), %s592_s25, 128  }
 0x276   : > { %1026 = vsyncadd (!%p792_p6), %s592_s25, 4294967168  ;;  %p24_p0 = scmp.ge.s32.totalorder %s1200_s26, 4   ;;  %s1384_s21 = smov %s1033_s22 }
 0x277   : > { %s1385_s22 = smov %s1037_s23  ;;  %s1386_s23 = smov %s1209_s11 }
 0x278   : > { %s1387_s24 = smov %s1200_s26  ;;  %26 = sbr.rel (!%p24_p0) target bundleno = 8 (0x8), region = 110 }
 0x27f   :  { %597 = vsyncpa [#allocation3], 1 }
 0x280   :  { %599 = vsyncpa [#allocation3 + $0x1], 1 }
 0x281   :  { %600 = vsyncpa [#allocation6], 1 }
 0x282   :  { %601 = vsyncpa [#allocation4], 1 }
 0x283   :  { %603 = vsyncpa [#allocation4 + $0x1], 1 }
 0x284   :  { %604 = vsyncpa [#allocation10], 1 }
 0x285   :  { %606 = vsyncpa [#allocation10 + $0x1], 1 }

</bundles_post_ra>
